<compile_context>
chip_gen: v6e
topology: v6e:2x2x1
jax: 0.10.0
libtpu: 0.0.40
codegen_flags: <defaults>
</compile_context>

<pallas_src>
import numpy as np
import jax
import jax.numpy as jnp
from jax.experimental import pallas as pl
from jax.experimental.pallas import tpu as pltpu


def make_kernel(R_pad, total_f):
    def kernel(xu_ref, wconv_ref, mask_ref, bconv_ref,
               fc1w_ref, fc1b_ref, fc2w_ref, fc2b_ref, out_ref):
        TB = out_ref.shape[0]

        # All taps of all conv branches in ONE 2-D matmul (bf16 operands, f32 acc).
        conv = jnp.dot(xu_ref[...], wconv_ref[...],
                       preferred_element_type=jnp.float32)           # (TB*R_pad, sumF)

        # Tile-aligned split (R_pad % 16 == 0), additive -1e30 mask at invalid /
        # padded positions, then global max-pool over positions.
        conv = conv.reshape(TB, R_pad, total_f) + mask_ref[...]
        pooled = jnp.max(conv, axis=1)                                # (TB, sumF)

        # bias + ReLU after the pool (exact, see header); dropout = identity.
        feat = jnp.maximum(pooled + bconv_ref[...], 0.0)

        # fc1 (+bias, ReLU) in fp32.
        h = jnp.dot(feat, fc1w_ref[...], preferred_element_type=jnp.float32)
        h = jnp.maximum(h + fc1b_ref[...], 0.0)

        # Eval-mode BatchNorm1d already folded into fc2' on host; dropout = identity.
        out = jnp.dot(h, fc2w_ref[...], preferred_element_type=jnp.float32)
        out_ref[...] = (out + fc2b_ref[...]).astype(out_ref.dtype)

    return kernel


def cnn_glove_forward(x, params, filter_sizes, num_filters, hidden_dim_fc,
                      num_classes, eps=1e-5):
    B, L, E = x.shape
    k_list, f_list = list(filter_sizes), list(num_filters)
    k_max, k_min = max(k_list), min(k_list)
    # Masked max-pool is exact only if every branch has >= 1 valid position.
    assert all(k <= L for k in k_list), "each conv branch needs >= 1 valid position"
    R = L - k_min + 1                      # longest valid conv-output length
    R_pad = ((R + 15) // 16) * 16          # sublane-aligned (bf16 tile 16, f32 tile 8)
    KE = k_max * E
    total_f = sum(f_list)
    H, C = hidden_dim_fc, num_classes
    Cp = pl.cdiv(C, 128) * 128             # lane-dense output slab

    # ---- host-side parameter fusion (exact, fp32) --------------------------
    w_fused = np.zeros((KE, total_f), np.float32)          # block conv weight
    b_fused = np.zeros((1, total_f), np.float32)           # fused conv biases
    addmask = np.full((1, R_pad, total_f), -1e30, np.float32)  # additive validity mask
    off = 0
    for i, (k, f) in enumerate(zip(k_list, f_list)):
        w = np.asarray(params[f"conv{i}_w"], np.float32)   # (k, E, f)
        for j in range(k):
            w_fused[j * E:(j + 1) * E, off:off + f] = w[j]
        b_fused[0, off:off + f] = np.asarray(params[f"conv{i}_b"], np.float32)
        addmask[0, :L - k + 1, off:off + f] = 0.0           # valid positions
        off += f

    # Fold eval-mode BatchNorm1d into fc2:  BN(z) = s*z + t,  s = gamma*rsqrt(var+eps).
    gamma = np.asarray(params["bn_gamma"], np.float32)
    beta = np.asarray(params["bn_beta"], np.float32)
    mean = np.asarray(params["bn_mean"], np.float32)
    var = np.asarray(params["bn_var"], np.float32)
    fc2_w = np.asarray(params["fc2_w"], np.float32)
    fc2_b = np.asarray(params["fc2_b"], np.float32)
    s = gamma / np.sqrt(var + eps)
    t = beta - mean * s
    fc2w_f = s[:, None] * fc2_w                             # (H, C)
    fc2b_f = fc2_b + t @ fc2_w                              # (C,)
    fc2w_p = np.zeros((H, Cp), np.float32); fc2w_p[:, :C] = fc2w_f
    fc2b_p = np.zeros((1, Cp), np.float32); fc2b_p[0, :C] = fc2b_f

    fc1_w = np.asarray(params["fc1_w"], np.float32)         # (total_f, H)
    fc1_b = np.asarray(params["fc1_b"], np.float32).reshape(1, H)

    # ---- batch tile: amortize per-step overhead within a VMEM budget -------
    per_row = 4 * R_pad * KE + 8 * R_pad * total_f + 8 * Cp + 4096
    TB = int(min(2048, max(8, (20 << 20) // per_row)))
    TB -= TB % 8
    if B <= TB:
        TB, B_pad = B, B
    else:
        B_pad = pl.cdiv(B, TB) * TB
    grid = (B_pad // TB,)

    # ---- wrapper-side im2col: lane-dense, sublane-aligned bf16 slab --------
    L_need = R + k_max - 1                 # every shifted view of length R in-bounds
    x_p = jnp.pad(x, ((0, B_pad - B), (0, L_need - L), (0, 0)))
    x_unf = jnp.concatenate([x_p[:, j:j + R, :] for j in range(k_max)], axis=-1)
    x_unf = jnp.pad(x_unf, ((0, 0), (0, R_pad - R), (0, 0)))
    x_unf = x_unf.astype(jnp.bfloat16).reshape(B_pad * R_pad, KE)

    inputs = [
        x_unf,
        jnp.asarray(w_fused, jnp.bfloat16),
        jnp.asarray(addmask, jnp.float32),
        jnp.asarray(b_fused, jnp.float32),
        jnp.asarray(fc1_w, jnp.float32),
        jnp.asarray(fc1_b, jnp.float32),
        jnp.asarray(fc2w_p, jnp.float32),
        jnp.asarray(fc2b_p, jnp.float32),
    ]

    def rep_spec(a):   # full-array block, constant across the batch grid
        return pl.BlockSpec(a.shape, lambda b, n=a.ndim: (0,) * n)

    in_specs = [pl.BlockSpec((TB * R_pad, KE), lambda b: (b, 0))]
    in_specs += [rep_spec(a) for a in inputs[1:]]
    out_spec = pl.BlockSpec((TB, Cp), lambda b: (b, 0))

    flops = (2 * B_pad * R_pad * KE * total_f
             + 2 * B_pad * total_f * H
             + 2 * B_pad * H * Cp)
    bytes_accessed = int(sum(a.size * a.dtype.itemsize for a in inputs)
                         + B_pad * Cp * 4)
    cost = pl.CostEstimate(flops=int(flops), transcendentals=0,
                           bytes_accessed=bytes_accessed)

    out = pl.pallas_call(
        make_kernel(R_pad, total_f),
        out_shape=jax.ShapeDtypeStruct((B_pad, Cp), jnp.float32),
        grid=grid,
        in_specs=in_specs,
        out_specs=out_spec,
        compiler_params=pltpu.CompilerParams(
            dimension_semantics=("parallel",),
            vmem_limit_bytes=48 << 20),
        cost_estimate=cost,
    )(*inputs)
    return out[:B, :C]


def reference(x, params, filter_sizes, eps=1e-5):
    """Pure-JAX fp32 reference mirroring the PyTorch forward (NCW conv, eval BN)."""
    xc = jnp.transpose(x, (0, 2, 1))                        # (B, E, L)
    pooled = []
    for i, _ in enumerate(filter_sizes):
        w = jnp.transpose(params[f"conv{i}_w"], (2, 1, 0))  # (F, E, k)
        y = jax.lax.conv_general_dilated(
            xc, w, window_strides=(1,), padding="VALID",
            dimension_numbers=("NCH", "OIH", "NCH"))
        y = y + params[f"conv{i}_b"][None, :, None]
        y = jnp.maximum(y, 0.0)
        pooled.append(jnp.max(y, axis=2))
    feat = jnp.concatenate(pooled, axis=1)
    h = feat @ params["fc1_w"] + params["fc1_b"]
    h = jnp.maximum(h, 0.0)
    h = (h - params["bn_mean"]) / jnp.sqrt(params["bn_var"] + eps)
    h = h * params["bn_gamma"] + params["bn_beta"]
    return h @ params["fc2_w"] + params["fc2_b"]


if __name__ == "__main__":
    # Small shapes consistent with the module.
    B, L, E = 4, 16, 32                 # batch, seq_len, embed_dim
    filter_sizes = (3, 4, 5)
    num_filters = (16, 16, 16)
    total_filters = sum(num_filters)
    H, C = 32, 8                        # hidden_dim_fc, num_classes

    kx, kp = jax.random.split(jax.random.PRNGKey(0))
    x = jax.random.normal(kx, (B, L, E), jnp.float32)

    keys = jax.random.split(kp, 16)
    params = {}
    for i, (k, f) in enumerate(zip(filter_sizes, num_filters)):
        params[f"conv{i}_w"] = 0.1 * jax.random.normal(keys[i], (k, E, f), jnp.float32)
        params[f"conv{i}_b"] = 0.1 * jax.random.normal(keys[3 + i], (f,), jnp.float32)
    params["fc1_w"] = 0.1 * jax.random.normal(keys[6], (total_filters, H), jnp.float32)
    params["fc1_b"] = 0.1 * jax.random.normal(keys[7], (H,), jnp.float32)
    params["bn_gamma"] = 1.0 + 0.1 * jax.random.normal(keys[8], (H,), jnp.float32)
    params["bn_beta"] = 0.1 * jax.random.normal(keys[9], (H,), jnp.float32)
    params["bn_mean"] = 0.1 * jax.random.normal(keys[10], (H,), jnp.float32)
    params["bn_var"] = 1.0 + 0.1 * jax.random.uniform(keys[11], (H,), jnp.float32)
    params["fc2_w"] = 0.1 * jax.random.normal(keys[12], (H, C), jnp.float32)
    params["fc2_b"] = 0.1 * jax.random.normal(keys[13], (C,), jnp.float32)

    out = cnn_glove_forward(x, params, filter_sizes, num_filters, H, C)
    out = jax.block_until_ready(out)

    ref = reference(x, params, filter_sizes)
    assert out.shape == (B, C), out.shape
    # bf16 conv operands with fp32 accumulation (fc stack fully fp32).
    assert jnp.allclose(out, ref, atol=5e-2, rtol=5e-2), float(jnp.max(jnp.abs(out - ref)))
    print("KERNEL_OK")
</pallas_src>

<mosaic_0001>
module attributes {stable_mosaic.version = 11 : i64} {
  func.func @kernel(%arg0: i32, %arg1: memref<64x160xbf16, #tpu.memory_space<vmem>>, %arg2: memref<160x48xbf16, #tpu.memory_space<vmem>>, %arg3: memref<1x16x48xf32, #tpu.memory_space<vmem>>, %arg4: memref<1x48xf32, #tpu.memory_space<vmem>>, %arg5: memref<48x32xf32, #tpu.memory_space<vmem>>, %arg6: memref<1x32xf32, #tpu.memory_space<vmem>>, %arg7: memref<32x128xf32, #tpu.memory_space<vmem>>, %arg8: memref<1x128xf32, #tpu.memory_space<vmem>>, %arg9: memref<4x128xf32, #tpu.memory_space<vmem>>) attributes {dimension_semantics = [#tpu.dimension_semantics<parallel>], iteration_bounds = array<i64: 1>, scalar_prefetch = 0 : i64, scratch_operands = 0 : i64, tpu.core_type = #tpu.core_type<tc>, window_params = [{transform_indices = @transform_0, window_bounds = array<i64: 64, 160>}, {pipeline_mode = #tpu.pipeline_mode<synchronous>, transform_indices = @transform_1, window_bounds = array<i64: 160, 48>}, {pipeline_mode = #tpu.pipeline_mode<synchronous>, transform_indices = @transform_2, window_bounds = array<i64: 1, 16, 48>}, {pipeline_mode = #tpu.pipeline_mode<synchronous>, transform_indices = @transform_3, window_bounds = array<i64: 1, 48>}, {pipeline_mode = #tpu.pipeline_mode<synchronous>, transform_indices = @transform_4, window_bounds = array<i64: 48, 32>}, {pipeline_mode = #tpu.pipeline_mode<synchronous>, transform_indices = @transform_5, window_bounds = array<i64: 1, 32>}, {pipeline_mode = #tpu.pipeline_mode<synchronous>, transform_indices = @transform_6, window_bounds = array<i64: 32, 128>}, {pipeline_mode = #tpu.pipeline_mode<synchronous>, transform_indices = @transform_7, window_bounds = array<i64: 1, 128>}, {transform_indices = @transform_8, window_bounds = array<i64: 4, 128>}]} {
    %c0 = arith.constant 0 : index
    %c0_0 = arith.constant 0 : index
    %0 = vector.load %arg1[%c0, %c0_0] : memref<64x160xbf16, #tpu.memory_space<vmem>>, vector<64x160xbf16>
    %c0_1 = arith.constant 0 : index
    %c0_2 = arith.constant 0 : index
    %1 = vector.load %arg2[%c0_1, %c0_2] : memref<160x48xbf16, #tpu.memory_space<vmem>>, vector<160x48xbf16>
    %cst = arith.constant dense<0.000000e+00> : vector<64x48xf32>
    %2 = tpu.matmul %0, %1, %cst {dimension_numbers = #tpu.dot_dimension_numbers<[1], [0], [0], [1], [0, 0, 1, 1], [], []>} : vector<64x160xbf16>, vector<160x48xbf16>, vector<64x48xf32> -> vector<64x48xf32>
    %3 = vector.shape_cast %2 : vector<64x48xf32> to vector<4x16x48xf32>
    %c0_3 = arith.constant 0 : index
    %c0_4 = arith.constant 0 : index
    %c0_5 = arith.constant 0 : index
    %4 = vector.load %arg3[%c0_3, %c0_4, %c0_5] : memref<1x16x48xf32, #tpu.memory_space<vmem>>, vector<1x16x48xf32>
    %5 = vector.broadcast %4 : vector<1x16x48xf32> to vector<4x16x48xf32>
    %6 = arith.addf %3, %5 : vector<4x16x48xf32>
    %cst_6 = arith.constant dense<0xFF800000> : vector<4x48xf32>
    %7 = vector.multi_reduction <maximumf>, %6, %cst_6 [1] : vector<4x16x48xf32> to vector<4x48xf32>
    %c0_7 = arith.constant 0 : index
    %c0_8 = arith.constant 0 : index
    %8 = vector.load %arg4[%c0_7, %c0_8] : memref<1x48xf32, #tpu.memory_space<vmem>>, vector<1x48xf32>
    %9 = vector.broadcast %8 : vector<1x48xf32> to vector<4x48xf32>
    %10 = arith.addf %7, %9 : vector<4x48xf32>
    %cst_9 = arith.constant 0.000000e+00 : f32
    %11 = vector.broadcast %cst_9 : f32 to vector<4x48xf32>
    %12 = arith.maximumf %10, %11 : vector<4x48xf32>
    %c0_10 = arith.constant 0 : index
    %c0_11 = arith.constant 0 : index
    %13 = vector.load %arg5[%c0_10, %c0_11] : memref<48x32xf32, #tpu.memory_space<vmem>>, vector<48x32xf32>
    %cst_12 = arith.constant dense<0.000000e+00> : vector<4x32xf32>
    %14 = tpu.matmul %12, %13, %cst_12 {dimension_numbers = #tpu.dot_dimension_numbers<[1], [0], [0], [1], [0, 0, 1, 1], [], []>} : vector<4x48xf32>, vector<48x32xf32>, vector<4x32xf32> -> vector<4x32xf32>
    %c0_13 = arith.constant 0 : index
    %c0_14 = arith.constant 0 : index
    %15 = vector.load %arg6[%c0_13, %c0_14] : memref<1x32xf32, #tpu.memory_space<vmem>>, vector<1x32xf32>
    %16 = vector.broadcast %15 : vector<1x32xf32> to vector<4x32xf32>
    %17 = arith.addf %14, %16 : vector<4x32xf32>
    %cst_15 = arith.constant 0.000000e+00 : f32
    %18 = vector.broadcast %cst_15 : f32 to vector<4x32xf32>
    %19 = arith.maximumf %17, %18 : vector<4x32xf32>
    %c0_16 = arith.constant 0 : index
    %c0_17 = arith.constant 0 : index
    %20 = vector.load %arg7[%c0_16, %c0_17] : memref<32x128xf32, #tpu.memory_space<vmem>>, vector<32x128xf32>
    %cst_18 = arith.constant dense<0.000000e+00> : vector<4x128xf32>
    %21 = tpu.matmul %19, %20, %cst_18 {dimension_numbers = #tpu.dot_dimension_numbers<[1], [0], [0], [1], [0, 0, 1, 1], [], []>} : vector<4x32xf32>, vector<32x128xf32>, vector<4x128xf32> -> vector<4x128xf32>
    %c0_19 = arith.constant 0 : index
    %c0_20 = arith.constant 0 : index
    %22 = vector.load %arg8[%c0_19, %c0_20] : memref<1x128xf32, #tpu.memory_space<vmem>>, vector<1x128xf32>
    %23 = vector.broadcast %22 : vector<1x128xf32> to vector<4x128xf32>
    %24 = arith.addf %21, %23 : vector<4x128xf32>
    %c0_21 = arith.constant 0 : index
    %c0_22 = arith.constant 0 : index
    %25 = vector.load %arg9[%c0_21, %c0_22] : memref<4x128xf32, #tpu.memory_space<vmem>>, vector<4x128xf32>
    tpu.vector_store %arg9[%c0_21, %c0_22], %24 {strides = array<i32>} : memref<4x128xf32, #tpu.memory_space<vmem>>, vector<4x128xf32>,
    return
  }
  func.func @transform_0(%arg0: i32) -> (i32, i32) {
    %c0_i32 = arith.constant 0 : i32
    %c0_i32_0 = arith.constant 0 : i32
    return %arg0, %c0_i32 : i32, i32
  }
  func.func @transform_1(%arg0: i32) -> (i32, i32) {
    %c0_i32 = arith.constant 0 : i32
    %c0_i32_0 = arith.constant 0 : i32
    %c0_i32_1 = arith.constant 0 : i32
    return %c0_i32, %c0_i32_0 : i32, i32
  }
  func.func @transform_2(%arg0: i32) -> (i32, i32, i32) {
    %c0_i32 = arith.constant 0 : i32
    %c0_i32_0 = arith.constant 0 : i32
    %c0_i32_1 = arith.constant 0 : i32
    %c0_i32_2 = arith.constant 0 : i32
    return %c0_i32, %c0_i32_0, %c0_i32_1 : i32, i32, i32
  }
  func.func @transform_3(%arg0: i32) -> (i32, i32) {
    %c0_i32 = arith.constant 0 : i32
    %c0_i32_0 = arith.constant 0 : i32
    %c0_i32_1 = arith.constant 0 : i32
    return %c0_i32, %c0_i32_0 : i32, i32
  }
  func.func @transform_4(%arg0: i32) -> (i32, i32) {
    %c0_i32 = arith.constant 0 : i32
    %c0_i32_0 = arith.constant 0 : i32
    %c0_i32_1 = arith.constant 0 : i32
    return %c0_i32, %c0_i32_0 : i32, i32
  }
  func.func @transform_5(%arg0: i32) -> (i32, i32) {
    %c0_i32 = arith.constant 0 : i32
    %c0_i32_0 = arith.constant 0 : i32
    %c0_i32_1 = arith.constant 0 : i32
    return %c0_i32, %c0_i32_0 : i32, i32
  }
  func.func @transform_6(%arg0: i32) -> (i32, i32) {
    %c0_i32 = arith.constant 0 : i32
    %c0_i32_0 = arith.constant 0 : i32
    %c0_i32_1 = arith.constant 0 : i32
    return %c0_i32, %c0_i32_0 : i32, i32
  }
  func.func @transform_7(%arg0: i32) -> (i32, i32) {
    %c0_i32 = arith.constant 0 : i32
    %c0_i32_0 = arith.constant 0 : i32
    %c0_i32_1 = arith.constant 0 : i32
    return %c0_i32, %c0_i32_0 : i32, i32
  }
  func.func @transform_8(%arg0: i32) -> (i32, i32) {
    %c0_i32 = arith.constant 0 : i32
    %c0_i32_0 = arith.constant 0 : i32
    return %arg0, %c0_i32 : i32, i32
  }
}

</mosaic_0001>

<bundles_post_ra>
// kernel: tpu_custom_call.1
= control target key start
LH: loop header
LB: loop body
LE: loop exit
PB: predicated region body
PF: predicated region fallthrough
CT: control target
= control target key end

     0   :  { %v606_v1 = vmov 0   ;;  %vm155_vm0 = vcmask 261120   ;;  %s785_s0 = inlined_call_operand.vmem [shape: bf16[64,160], index: 0, kind: input, shape index: {}]   ;;  %s786_s1 = inlined_call_operand.vmem [shape: bf16[160,48], index: 1, kind: input, shape index: {}]   ;;  %s787_s2 = inlined_call_operand.vmem [shape: f32[1,16,48], index: 2, kind: input, shape index: {}]   ;;  %s788_s3 = inlined_call_operand.vmem [shape: f32[1,48], index: 3, kind: input, shape index: {}]   ;;  %s789_s4 = inlined_call_operand.vmem [shape: f32[48,32], index: 4, kind: input, shape index: {}]   ;;  %s790_s5 = inlined_call_operand.vmem [shape: f32[1,32], index: 5, kind: input, shape index: {}]   ;;  %s791_s6 = inlined_call_operand.vmem [shape: f32[32,128], index: 6, kind: input, shape index: {}]   ;;  %s792_s7 = inlined_call_operand.vmem [shape: f32[1,128], index: 7, kind: input, shape index: {}]   ;;  %s793_s8 = inlined_call_operand.hbm [shape: f32[4,128], index: 8, kind: output, shape index: {}]  }
   0x1   :  { %v562_v0 = vld [vmem:[%s786_s1 + $0x38] sm:$0xff]   ;;  %168 = vmatprep.subr.bf16.mxu0 %v606_v1  ;;  %v563_v2 = vld [vmem:[%s786_s1 + $0x30] sm:$0xff]   ;;  %v564_v3 = vld [vmem:[%s786_s1 + $0x28] sm:$0xff]  }
   0x2   :  { %169 = vmatpush1.bf16.msra.mxu0 %v562_v0  ;;  %v565_v4 = vld [vmem:[%s786_s1 + $0x20] sm:$0xff]   ;;  %v566_v6 = vld [vmem:[%s786_s1 + $0x18] sm:$0xff]  }
   0x3   :  { %170 = vmatprep.subr.bf16.mxu0 %v606_v1  ;;  %v574_v5 = vld [vmem:[%s785_s0 + $0x4] ss:$8 sps:$4 sm:$0xff]  }
   0x4   :  { %511 = vmatprep.mubr.msk.bf16.mxu0 %vm155_vm0, %v574_v5 }
   0x6   :  { %171 = vmatpush1.bf16.msra.mxu0 %v563_v2 }
   0x7   :  { %172 = vmatprep.subr.bf16.mxu0 %v606_v1 }
   0xa   :  { %173 = vmatpush1.bf16.msra.mxu0 %v564_v3 }
   0xb   :  { %174 = vmatprep.subr.bf16.mxu0 %v606_v1 }
   0xe   :  { %175 = vmatpush1.bf16.msra.mxu0 %v565_v4 }
   0xf   :  { %176 = vmatprep.subr.bf16.mxu0 %v606_v1 }
  0x10   :  { %13 = vsyncpa [#allocation3], 0  ;;  %v567_v7 = vld [vmem:[%s786_s1 + $0x10] sm:$0xff]   ;;  %v568_v8 = vld [vmem:[%s786_s1 + $0x8] sm:$0xff]   ;;  %v607_v19 = vmov 0.0   ;;  %vm608_vm1 = vmmov 0  }
  0x11   :  { %v569_v9 = vld [vmem:[%s786_s1] sm:$0xff]   ;;  %v570_v10 = vld [vmem:[%s786_s1 + $0x48] sm:$0xff]   ;;  %v575_v13 = vld [vmem:[%s785_s0 + $0x14] ss:$8 sps:$4 sm:$0xff]   ;;  %532 = vmatprep.subr.mxu1 %v607_v19  ;;  %544 = vmatprep.mubr.msk.f32.mxu1 %vm608_vm1, %v607_v19  ;;  %vm243_vm2 = vcmask 392192   ;;  %vm313_vm3 = vcmask 1041409  }
  0x12   :  { %177 = vmatpush1.bf16.msra.mxu0 %v566_v6  ;;  %v571_v11 = vld [vmem:[%s786_s1 + $0x40] sm:$0xff]   ;;  %v577_v14 = vld [vmem:[%s785_s0 + $0x10] ss:$8 sps:$4 sm:$0xff]   ;;  %v581_v17 = vld [vmem:[%s785_s0 + $0x34] ss:$8 sps:$4 sm:$0xff]   ;;  %vm316_vm4 = vcmask 1042434  }
  0x13   :  { %178 = vmatprep.subr.bf16.mxu0 %v606_v1  ;;  %v572_v12 = vld [vmem:[%s785_s0] ss:$8 sps:$4 sm:$0xff]   ;;  %v578_v15 = vld [vmem:[%s785_s0 + $0x24] ss:$8 sps:$4 sm:$0xff]   ;;  %v583_v18 = vld [vmem:[%s785_s0 + $0x30] ss:$8 sps:$4 sm:$0xff]  }
  0x14   :  { %v580_v16 = vld [vmem:[%s785_s0 + $0x20] ss:$8 sps:$4 sm:$0xff]   ;;  %v298_v22 = vld [vmem:[%s789_s4 + $0x18] sm:$0xff]  ;;  %v297_v23 = vld [vmem:[%s789_s4 + $0x10] sm:$0xff]  ;;  %vm319_vm5 = vcmask 1043459   ;;  %s609_s21 = smov [#allocation2]  }
  0x15   :  { %v300_v20 = vld [vmem:[%s789_s4 + $0x28] sm:$0xff]  ;;  %v299_v21 = vld [vmem:[%s789_s4 + $0x20] sm:$0xff]  ;;  %s485_s22 = sshll.u32 %s609_s21, 4  ;;  %s486_s22 = int_to_ptr.vmem [resolvable:$true] %s485_s22 }
  0x16   :  { %179 = vmatpush1.bf16.msra.mxu0 %v567_v7  ;;  %533 = vmatpush3.msra.mxu1 %v300_v20  ;;  %v296_v24 = vld [vmem:[%s789_s4 + $0x8] sm:$0xff]  ;;  %v295_v25 = vld [vmem:[%s789_s4] sm:$0xff]  ;;  %p589_p1 = scmp.lt.s32.totalorder %s486_s22, %s486_s22 }
  0x17   :  { %180 = vmatprep.subr.bf16.mxu0 %v606_v1  ;;  %534 = vmatprep.subr.mxu1 %v607_v19  ;;  %v234_v29 = vld [vmem:[%s787_s2 + $0x8] sm:$0xff]  ;;  %v233_v31 = vld [vmem:[%s787_s2] sm:$0xff] }
  0x18   :  { %535 = vmatpush3.msra.mxu1 %v299_v21  ;;  %v515_v20 = vld [vmem:[%s788_s3] ss:$0 sm:$0xff] }
  0x19   :  { %536 = vmatprep.subr.mxu1 %v607_v19 }
  0x1a   :  { %181 = vmatpush1.bf16.msra.mxu0 %v568_v8  ;;  %537 = vmatpush3.msra.mxu1 %v298_v22 }
  0x1b   :  { %182 = vmatprep.subr.bf16.mxu0 %v606_v1  ;;  %538 = vmatprep.subr.mxu1 %v607_v19 }
  0x1c   :  { %539 = vmatpush3.msra.mxu1 %v297_v23 }
  0x1d   :  { %540 = vmatprep.subr.mxu1 %v607_v19 }
  0x1e   :  { %183 = vmatpush1.bf16.msra.mxu0 %v569_v9  ;;  %541 = vmatpush3.msra.mxu1 %v296_v24 }
  0x1f   :  { %196 = vmatprep.subr.bf16.mxu0 %v606_v1  ;;  %542 = vmatprep.subr.mxu1 %v607_v19 }
  0x20   :  { %543 = vmatpush3.msra.mxu1 %v295_v25 }
  0x21   :  { %547 = vmatprep.subr.mxu1 %v607_v19 }
  0x22   :  { %197 = vmatpush2.bf16.msra.mxu0 %v570_v10 }
  0x23   :  { %198 = vmatprep.subr.bf16.mxu0 %v606_v1 }
  0x26   :  { %199 = vmatpush2.bf16.msra.mxu0 %v571_v11 }
  0x29   :  { %201 = vmatmul.mubr.bf16.vlgmr.msra.gmra.mxu0 %v572_v12 }
  0x2a   :  { %512 = vmatprep.mubr.msk.bf16.mxu0 %vm155_vm0, %v575_v13 }
  0x31   :  { %209 = vmatmul.mubr.bf16.gmra.mxu0 %v577_v14 }
  0x32   :  { %513 = vmatprep.mubr.msk.bf16.mxu0 %vm155_vm0, %v578_v15 }
  0x39   :  { %217 = vmatmul.mubr.bf16.gmra.mxu0 %v580_v16 }
  0x3a   :  { %514 = vmatprep.mubr.msk.bf16.mxu0 %vm155_vm0, %v581_v17 }
  0x41   :  { %225 = vmatmul.mubr.bf16.gmra.mxu0 %v583_v18 }
  0xe9   :  { %v202_v26 = vpop.f32.mrf.mxu0 }
  0xea   :  { %v235_v35 = vadd.f32 %v233_v31, %v202_v26 }
  0xeb   :  { %v204_v27 = vpop.f32.mrf.mxu0 }
  0xec   :  { %v244_v41 = vsel %vm243_vm2, %v235_v35, -inf }
  0xed   :  { %v205_v28 = vpop.f32.mrf.mxu0 }
  0xee   :  { %v236_v33 = vadd.f32 %v234_v29, %v205_v28 }
  0xef   :  { %v207_v30 = vpop.f32.mrf.mxu0 }
  0xf0   :  { %v245_v38 = vsel %vm243_vm2, %v236_v33, -inf }
  0xf1   :  { %v210_v32 = vpop.f32.mrf.mxu0  ;;  %v246_v44 = vmax.f32 %v244_v41, %v245_v38  ;;  %v396_v41 = vld [vmem:[%s791_s6 + $0x10] sm:$0xff] }
  0xf2   :  { %v237_v36 = vadd.f32 %v233_v31, %v210_v32 }
  0xf3   :  { %v212_v34 = vpop.f32.mrf.mxu0  ;;  %v247_v50 = vrot.slane %v246_v44, 4 }
  0xf4   :  { %v253_v42 = vsel %vm243_vm2, %v237_v36, -inf }
  0xf5   :  { %v213_v37 = vpop.f32.mrf.mxu0  ;;  %v248_v58 = vmax.f32 %v246_v44, %v247_v50  ;;  %v516_v44 = vld [vmem:[%s790_s5] ss:$0 sm:$0xff] }
  0xf6   :  { %v238_v39 = vadd.f32 %v234_v29, %v213_v37 }
  0xf7   :  { %v215_v40 = vpop.f32.mrf.mxu0  ;;  %v249_v1 = vrot.slane %v248_v58, 2 }
  0xf8   :  { %v254_v43 = vsel %vm243_vm2, %v238_v39, -inf  ;;  %v397_v39 = vld [vmem:[%s791_s6 + $0x18] sm:$0xff] }
  0xf9   :  { %v255_v45 = vmax.f32 %v253_v42, %v254_v43  ;;  %v218_v46 = vpop.f32.mrf.mxu0  ;;  %v250_v10 = vmax.f32 %v248_v58, %v249_v1  ;;  %v395_v42 = vld [vmem:[%s791_s6 + $0x8] sm:$0xff]  ;;  %v394_v43 = vld [vmem:[%s791_s6] sm:$0xff]  ;;  %s584_s6 = scalar_lea.vmem %s486_s22, 64 }
  0xfa   :  { %v239_v49 = vadd.f32 %v233_v31, %v218_v46  ;;  %p585_p0 = scmp.ne.s32.totalorder %s486_s22, %s584_s6  ;;  %p590_p2 = scmp.lt.s32.totalorder %s584_s6, %s584_s6 }
  0xfb   :  { %v256_v47 = vrot.slane %v255_v45, 4  ;;  %v220_v48 = vpop.f32.mrf.mxu0  ;;  %v251_v16 = vrot.slane %v250_v10, 1 }
  0xfc   :  { %v262_v56 = vsel %vm243_vm2, %v239_v49, -inf  ;;  %v518_v49 = vld [vmem:[%s792_s7] ss:$0 sm:$0xff]  ;;  %p591_p3 = por %p590_p2, %p589_p1 }
  0xfd   :  { %v257_v51 = vmax.f32 %v255_v45, %v256_v47  ;;  %v221_v52 = vpop.f32.mrf.mxu0  ;;  %v252_v24 = vmax.f32 %v250_v10, %v251_v16 }
  0xfe   :  { %v240_v53 = vadd.f32 %v234_v29, %v221_v52  ;;  %p592_p4 = pnand %p591_p3, %p585_p0 }
  0xff   :  { %v258_v54 = vrot.slane %v257_v51, 2  ;;  %v223_v55 = vpop.f32.mrf.mxu0 }
 0x100   :  { %v263_v57 = vsel %vm243_vm2, %v240_v53, -inf }
 0x101   :  { %v264_v59 = vmax.f32 %v262_v56, %v263_v57  ;;  %v226_v60 = vpop.f32.mrf.mxu0  ;;  %v259_v61 = vmax.f32 %v257_v51, %v258_v54 }
 0x102   :  { %v241_v0 = vadd.f32 %v233_v31, %v226_v60 }
 0x103   :  { %v265_v62 = vrot.slane %v264_v59, 4  ;;  %v228_v63 = vpop.f32.mrf.mxu0  ;;  %v260_v5 = vrot.slane %v259_v61, 1 }
 0x104   :  { %v271_v8 = vsel %vm243_vm2, %v241_v0, -inf }
 0x105   :  { %v266_v2 = vmax.f32 %v264_v59, %v265_v62  ;;  %v229_v3 = vpop.f32.mrf.mxu0  ;;  %v261_v13 = vmax.f32 %v259_v61, %v260_v5 }
 0x106   :  { %v242_v4 = vadd.f32 %v234_v29, %v229_v3  ;;  %v287_v29 = vadd.f32 %v515_v20, %v252_v24 }
 0x107   :  { %v267_v6 = vrot.slane %v266_v2, 2  ;;  %v231_v7 = vpop.f32.mrf.mxu0  ;;  %v288_v21 = vadd.f32 %v515_v20, %v261_v13 }
 0x108   :  { %v272_v9 = vsel %vm243_vm2, %v242_v4, -inf  ;;  %v291_v34 = vmax.f32 %v287_v29, 0.0 }
 0x109   :  { %v268_v11 = vmax.f32 %v266_v2, %v267_v6  ;;  %v273_v12 = vmax.f32 %v271_v8, %v272_v9  ;;  %v292_v26 = vmax.f32 %v288_v21, 0.0 }
 0x10b   :  { %v269_v14 = vrot.slane %v268_v11, 1  ;;  %v274_v15 = vrot.slane %v273_v12, 4  ;;  %v312_v32 = vrot.slane %v292_v26, 7 }
 0x10d   :  { %v270_v17 = vmax.f32 %v268_v11, %v269_v14  ;;  %v275_v18 = vmax.f32 %v273_v12, %v274_v15  ;;  %v314_v36 = vsel %vm313_vm3, %v312_v32, %v291_v34 }
 0x10f   :  { %v276_v22 = vrot.slane %v275_v18, 2  ;;  %v289_v23 = vadd.f32 %v515_v20, %v270_v17 }
 0x111   :  { %v277_v25 = vmax.f32 %v275_v18, %v276_v22  ;;  %v293_v28 = vmax.f32 %v289_v23, 0.0 }
 0x113   :  { %v278_v27 = vrot.slane %v277_v25, 1  ;;  %v315_v33 = vrot.slane %v293_v28, 6 }
 0x115   :  { %v279_v30 = vmax.f32 %v277_v25, %v278_v27  ;;  %v317_v38 = vsel %vm316_vm4, %v315_v33, %v314_v36 }
 0x117   :  { %v290_v31 = vadd.f32 %v515_v20, %v279_v30 }
 0x119   :  { %v294_v35 = vmax.f32 %v290_v31, 0.0 }
 0x11b   :  { %v318_v37 = vrot.slane %v294_v35, 5 }
 0x11d   :  { %v320_v40 = vsel %vm319_vm5, %v318_v37, %v317_v38 }
 0x11e   :  { %545 = vmatmul.mubr.msk.f32.vlgmr.msra.gmra.mxu1 %vm243_vm2, %v320_v40 }
 0x11f   :  { %548 = vmatpush3.msra.mxu1 %v397_v39  ;;  %555 = vmatprep.mubr.msk.f32.mxu1 %vm608_vm1, %v607_v19 }
 0x120   :  { %549 = vmatprep.subr.mxu1 %v607_v19 }
 0x121   :  { %550 = vmatpush3.msra.mxu1 %v396_v41 }
 0x122   :  { %551 = vmatprep.subr.mxu1 %v607_v19 }
 0x123   :  { %552 = vmatpush3.msra.mxu1 %v395_v42 }
 0x124   :  { %553 = vmatprep.subr.mxu1 %v607_v19 }
 0x125   :  { %554 = vmatpush3.msra.mxu1 %v394_v43 }
 0x1de   :  { %v389_v45 = vpop.f32.mrf.mxu1 }
 0x1df   :  { %v390_v46 = vadd.f32 %v516_v44, %v389_v45 }
 0x1e0   :  { %v546_v47 = vpop.f32.mrf.mxu1 }
 0x1e1   :  { %v393_v48 = vmax.f32 %v390_v46, 0.0 }
 0x1e3   :  { %556 = vmatmul.mubr.msk.f32.vlgmr.msra.gmra.mxu1 %vm155_vm0, %v393_v48 }
 0x2a3   :  { %v474_v19 = vpop.f32.mrf.mxu1 }
 0x2a4   :  { %v475_v50 = vadd.f32 %v518_v49, %v474_v19 }
 0x2a5   :  { %v557_v51 = vpop.f32.mrf.mxu1 }
 0x2a6   :  { %478 = vst [vmem:[#allocation2] sm:$0xf] %v475_v50 }
 0x2a7   :  { %595 = shalt.err (!%p592_p4)
}
 0x2a8   :  { %488 = dma.vmem_to_hbm [thread:$0]  %s486_s22, 64, %s793_s8, [#allocation3]  }
 0x2a9   :  { %604 = dma.done.wait [#allocation3], 64  }
 0x2aa   :  { %605 = vsyncadd [#allocation3], 4294967232 }
 0x2ab   :  { %492 = vsyncpa [#allocation3], 1 }

</bundles_post_ra>
